<compile_context>
chip_gen: v6e
topology: v6e:2x2x1
jax: 0.10.0
libtpu: 0.0.40
codegen_flags: <defaults>
</compile_context>

<pallas_src>
import functools

import numpy as np
import jax
import jax.numpy as jnp
from jax import lax
from jax.experimental import pallas as pl
from jax.experimental.pallas import tpu as pltpu


def _beamform_kernel(x_ref, w_ref, b_ref, gw_ref, o_ref, *, sqrt_p, M, KK):
    # One fused MXU pass for all three linear heads: y = x @ [Wa|Wdr|Wdi] + b.
    y = (jnp.dot(x_ref[...], w_ref[...], preferred_element_type=jnp.float32)
         + b_ref[...])                                   # (tb, M + 2*KK)

    theta = y[:, :M]
    dr = y[:, M:M + KK]                                  # flat D_real, (tb, K*K)
    di = y[:, M + KK:M + 2 * KK]                         # flat D_imag, (tb, K*K)

    cos_t = jnp.cos(theta)                               # EUP
    sin_t = jnp.sin(theta)

    # ||A C D||_F^2 == trace(D^H (C^T C) D); on the flat layout:
    #   fro2 = sum((D_flat @ Gw) * D_flat),  Gw = kron(C^T C, I_K)
    gw = gw_ref[...]
    qr = jnp.dot(dr, gw, preferred_element_type=jnp.float32)
    qi = jnp.dot(di, gw, preferred_element_type=jnp.float32)
    fro2 = jnp.sum(qr * dr + qi * di, axis=-1, keepdims=True)   # (tb, 1)
    scale = sqrt_p * lax.rsqrt(fro2)

    # Single lane-dense packed store: [cos | sin | D_real*scale | D_imag*scale]
    o_ref[...] = jnp.concatenate(
        [cos_t, sin_t, dr * scale, di * scale], axis=-1)


def sub_array_hybrid_beamforming(x, wa, ba, wdr, bdr, wdi, bdi, C, P):
    """Pallas wrapper. Returns (A_real, A_imag, D_real, D_imag, C)."""
    B, F = x.shape
    M = wa.shape[1]
    K = C.shape[1]
    KK = K * K
    N_all = M + 2 * KK
    N_out = 2 * M + 2 * KK

    # Host-side (XLA) prep: fused weights/bias and the flat Gram matrix.
    w_all = jnp.concatenate([wa, wdr, wdi], axis=1)            # (F, M+2K^2)
    b_all = jnp.concatenate([ba, bdr, bdi], axis=1)            # (1, M+2K^2)
    gw = jnp.kron(C.T @ C, jnp.eye(K, dtype=C.dtype))          # (K^2, K^2)

    # Batch tiling: pad rows to the f32 sublane (8); parallel grid over batch.
    B_pad = ((B + 7) // 8) * 8
    tb = min(B_pad, 256)
    B_pad = ((B_pad + tb - 1) // tb) * tb
    x_p = x if B_pad == B else jnp.zeros((B_pad, F), x.dtype).at[:B].set(x)
    nb = B_pad // tb

    kernel = functools.partial(_beamform_kernel, sqrt_p=float(np.sqrt(P)),
                               M=M, KK=KK)

    packed = pl.pallas_call(
        kernel,
        grid=(nb,),
        in_specs=[
            pl.BlockSpec((tb, F), lambda i: (i, 0)),
            pl.BlockSpec((F, N_all), lambda i: (0, 0)),
            pl.BlockSpec((1, N_all), lambda i: (0, 0)),
            pl.BlockSpec((KK, KK), lambda i: (0, 0)),
        ],
        out_specs=pl.BlockSpec((tb, N_out), lambda i: (i, 0)),
        out_shape=jax.ShapeDtypeStruct((B_pad, N_out), jnp.float32),
        compiler_params=pltpu.CompilerParams(
            dimension_semantics=("parallel",)),
    )(x_p, w_all, b_all, gw)

    # Layout-only post-processing in XLA (diag_embed + reshape).
    y = packed[:B]
    cos_t = y[:, :M]
    sin_t = y[:, M:2 * M]
    d_real = y[:, 2 * M:2 * M + KK].reshape(B, K, K)
    d_imag = y[:, 2 * M + KK:].reshape(B, K, K)

    eye = jnp.eye(M, dtype=y.dtype)
    A_real = cos_t[:, :, None] * eye
    A_imag = sin_t[:, :, None] * eye
    return A_real, A_imag, d_real, d_imag, C


def _reference_forward(x, wa, ba, wdr, bdr, wdi, bdi, C, P):
    """Pure-JAX transcription of the PyTorch forward (for verification)."""
    B = x.shape[0]
    K = C.shape[1]
    theta = x @ wa + ba
    A_real = jax.vmap(jnp.diag)(jnp.cos(theta))
    A_imag = jax.vmap(jnp.diag)(jnp.sin(theta))
    D_real = (x @ wdr + bdr).reshape(B, K, K)
    D_imag = (x @ wdi + bdi).reshape(B, K, K)
    ArC = jnp.matmul(A_real, C)
    AiC = jnp.matmul(A_imag, C)
    V_real = jnp.matmul(ArC, D_real) - jnp.matmul(AiC, D_imag)
    V_imag = jnp.matmul(ArC, D_imag) + jnp.matmul(AiC, D_real)
    fro = jnp.sqrt(jnp.sum(V_real ** 2 + V_imag ** 2, axis=(1, 2))).reshape(B, 1, 1)
    D_real = np.sqrt(P) * D_real / fro
    D_imag = np.sqrt(P) * D_imag / fro
    return A_real, A_imag, D_real, D_imag, C


if __name__ == "__main__":
    # Small, consistent shapes: M antennas split into K groups, P total power.
    B, F, M, K, P = 2, 32, 16, 4, 2.0

    key = jax.random.PRNGKey(0)
    kx, kwa, kba, kwr, kbr, kwi, kbi = jax.random.split(key, 7)

    x = jax.random.normal(kx, (B, F), dtype=jnp.float32)

    # Linear params stored as (in, out); biases as (1, out).
    wa = jax.random.normal(kwa, (F, M), dtype=jnp.float32) * 0.1
    ba = jax.random.normal(kba, (1, M), dtype=jnp.float32) * 0.1
    wdr = jax.random.normal(kwr, (F, K * K), dtype=jnp.float32) * 0.1
    bdr = jax.random.normal(kbr, (1, K * K), dtype=jnp.float32) * 0.1
    wdi = jax.random.normal(kwi, (F, K * K), dtype=jnp.float32) * 0.1
    bdi = jax.random.normal(kbi, (1, K * K), dtype=jnp.float32) * 0.1

    # Antenna-selection mask: block_diag of K blocks of ones((M//K, 1)) -> (M, K)
    group = jnp.arange(M) // (M // K)
    C = (group[:, None] == jnp.arange(K)[None, :]).astype(jnp.float32)

    outs = sub_array_hybrid_beamforming(x, wa, ba, wdr, bdr, wdi, bdi, C, P)
    outs = jax.block_until_ready(outs)

    refs = _reference_forward(x, wa, ba, wdr, bdr, wdi, bdi, C, P)

    for o, r in zip(outs, refs):
        np.testing.assert_allclose(np.asarray(o), np.asarray(r),
                                   rtol=1e-4, atol=1e-5)

    print("KERNEL_OK")
</pallas_src>

<mosaic_0001>
module attributes {stable_mosaic.version = 11 : i64} {
  func.func @_beamform_kernel(%arg0: i32, %arg1: memref<8x32xf32, #tpu.memory_space<vmem>>, %arg2: memref<32x48xf32, #tpu.memory_space<vmem>>, %arg3: memref<1x48xf32, #tpu.memory_space<vmem>>, %arg4: memref<16x16xf32, #tpu.memory_space<vmem>>, %arg5: memref<8x64xf32, #tpu.memory_space<vmem>>) attributes {dimension_semantics = [#tpu.dimension_semantics<parallel>], iteration_bounds = array<i64: 1>, scalar_prefetch = 0 : i64, scratch_operands = 0 : i64, tpu.core_type = #tpu.core_type<tc>, window_params = [{transform_indices = @transform_0, window_bounds = array<i64: 8, 32>}, {pipeline_mode = #tpu.pipeline_mode<synchronous>, transform_indices = @transform_1, window_bounds = array<i64: 32, 48>}, {pipeline_mode = #tpu.pipeline_mode<synchronous>, transform_indices = @transform_2, window_bounds = array<i64: 1, 48>}, {pipeline_mode = #tpu.pipeline_mode<synchronous>, transform_indices = @transform_3, window_bounds = array<i64: 16, 16>}, {transform_indices = @transform_4, window_bounds = array<i64: 8, 64>}]} {
    %c0 = arith.constant 0 : index
    %c0_0 = arith.constant 0 : index
    %0 = vector.load %arg1[%c0, %c0_0] : memref<8x32xf32, #tpu.memory_space<vmem>>, vector<8x32xf32>
    %c0_1 = arith.constant 0 : index
    %c0_2 = arith.constant 0 : index
    %1 = vector.load %arg2[%c0_1, %c0_2] : memref<32x48xf32, #tpu.memory_space<vmem>>, vector<32x48xf32>
    %cst = arith.constant dense<0.000000e+00> : vector<8x48xf32>
    %2 = tpu.matmul %0, %1, %cst {dimension_numbers = #tpu.dot_dimension_numbers<[1], [0], [0], [1], [0, 0, 1, 1], [], []>} : vector<8x32xf32>, vector<32x48xf32>, vector<8x48xf32> -> vector<8x48xf32>
    %c0_3 = arith.constant 0 : index
    %c0_4 = arith.constant 0 : index
    %3 = vector.load %arg3[%c0_3, %c0_4] : memref<1x48xf32, #tpu.memory_space<vmem>>, vector<1x48xf32>
    %4 = vector.broadcast %3 : vector<1x48xf32> to vector<8x48xf32>
    %5 = arith.addf %2, %4 : vector<8x48xf32>
    %6 = vector.extract_strided_slice %5 {offsets = [0, 0], sizes = [8, 16], strides = [1, 1]} : vector<8x48xf32> to vector<8x16xf32>
    %7 = vector.extract_strided_slice %5 {offsets = [0, 16], sizes = [8, 16], strides = [1, 1]} : vector<8x48xf32> to vector<8x16xf32>
    %8 = vector.extract_strided_slice %5 {offsets = [0, 32], sizes = [8, 16], strides = [1, 1]} : vector<8x48xf32> to vector<8x16xf32>
    %9 = math.cos %6 : vector<8x16xf32>
    %10 = math.sin %6 : vector<8x16xf32>
    %c0_5 = arith.constant 0 : index
    %c0_6 = arith.constant 0 : index
    %11 = vector.load %arg4[%c0_5, %c0_6] : memref<16x16xf32, #tpu.memory_space<vmem>>, vector<16x16xf32>
    %cst_7 = arith.constant dense<0.000000e+00> : vector<8x16xf32>
    %12 = tpu.matmul %7, %11, %cst_7 {dimension_numbers = #tpu.dot_dimension_numbers<[1], [0], [0], [1], [0, 0, 1, 1], [], []>} : vector<8x16xf32>, vector<16x16xf32>, vector<8x16xf32> -> vector<8x16xf32>
    %cst_8 = arith.constant dense<0.000000e+00> : vector<8x16xf32>
    %13 = tpu.matmul %8, %11, %cst_8 {dimension_numbers = #tpu.dot_dimension_numbers<[1], [0], [0], [1], [0, 0, 1, 1], [], []>} : vector<8x16xf32>, vector<16x16xf32>, vector<8x16xf32> -> vector<8x16xf32>
    %14 = arith.mulf %12, %7 : vector<8x16xf32>
    %15 = arith.mulf %13, %8 : vector<8x16xf32>
    %16 = arith.addf %14, %15 : vector<8x16xf32>
    %cst_9 = arith.constant dense<0.000000e+00> : vector<8xf32>
    %17 = vector.multi_reduction <add>, %16, %cst_9 [1] : vector<8x16xf32> to vector<8xf32>
    %18 = vector.shape_cast %17 : vector<8xf32> to vector<8x1xf32>
    %19 = math.rsqrt %18 : vector<8x1xf32>
    %cst_10 = arith.constant 1.41421354 : f32
    %20 = vector.broadcast %cst_10 : f32 to vector<8x1xf32>
    %21 = arith.mulf %20, %19 : vector<8x1xf32>
    %22 = vector.broadcast %21 : vector<8x1xf32> to vector<8x16xf32>
    %23 = arith.mulf %7, %22 : vector<8x16xf32>
    %24 = vector.broadcast %21 : vector<8x1xf32> to vector<8x16xf32>
    %25 = arith.mulf %8, %24 : vector<8x16xf32>
    %26 = tpu.concatenate %9, %10, %23, %25 in 1 : vector<8x16xf32>, vector<8x16xf32>, vector<8x16xf32>, vector<8x16xf32> -> vector<8x64xf32>
    %c0_11 = arith.constant 0 : index
    %c0_12 = arith.constant 0 : index
    %27 = vector.load %arg5[%c0_11, %c0_12] : memref<8x64xf32, #tpu.memory_space<vmem>>, vector<8x64xf32>
    tpu.vector_store %arg5[%c0_11, %c0_12], %26 {strides = array<i32>} : memref<8x64xf32, #tpu.memory_space<vmem>>, vector<8x64xf32>,
    return
  }
  func.func @transform_0(%arg0: i32) -> (i32, i32) {
    %c0_i32 = arith.constant 0 : i32
    %c0_i32_0 = arith.constant 0 : i32
    return %arg0, %c0_i32 : i32, i32
  }
  func.func @transform_1(%arg0: i32) -> (i32, i32) {
    %c0_i32 = arith.constant 0 : i32
    %c0_i32_0 = arith.constant 0 : i32
    %c0_i32_1 = arith.constant 0 : i32
    return %c0_i32, %c0_i32_0 : i32, i32
  }
  func.func @transform_2(%arg0: i32) -> (i32, i32) {
    %c0_i32 = arith.constant 0 : i32
    %c0_i32_0 = arith.constant 0 : i32
    %c0_i32_1 = arith.constant 0 : i32
    return %c0_i32, %c0_i32_0 : i32, i32
  }
  func.func @transform_3(%arg0: i32) -> (i32, i32) {
    %c0_i32 = arith.constant 0 : i32
    %c0_i32_0 = arith.constant 0 : i32
    %c0_i32_1 = arith.constant 0 : i32
    return %c0_i32, %c0_i32_0 : i32, i32
  }
  func.func @transform_4(%arg0: i32) -> (i32, i32) {
    %c0_i32 = arith.constant 0 : i32
    %c0_i32_0 = arith.constant 0 : i32
    return %arg0, %c0_i32 : i32, i32
  }
}

</mosaic_0001>

<bundles_post_ra>
// kernel: tpu_custom_call.1
= control target key start
LH: loop header
LB: loop body
LE: loop exit
PB: predicated region body
PF: predicated region fallthrough
CT: control target
= control target key end

     0   :  { %9 = vsyncpa [#allocation3], 0  ;;  %s817_s0 = inlined_call_operand.hbm [shape: f32[8,32], index: 0, kind: input, shape index: {}]   ;;  %s818_s1 = inlined_call_operand.hbm [shape: f32[32,48], index: 1, kind: input, shape index: {}]   ;;  %s819_s2 = inlined_call_operand.vmem [shape: f32[1,48], index: 2, kind: input, shape index: {}]   ;;  %s820_s3 = inlined_call_operand.hbm [shape: f32[16,16], index: 3, kind: input, shape index: {}]   ;;  %s821_s4 = inlined_call_operand.hbm [shape: f32[8,64], index: 4, kind: output, shape index: {}]  }
   0x1   :  { %10 = vsyncpa [#allocation6], 0 }
   0x2   :  { %11 = vsyncpa [#allocation4], 0  ;;  %s704_s15 = smov [#allocation5]  }
   0x3   :  { %s27_s16 = sshll.u32 %s704_s15, 4  ;;  %s28_s16 = int_to_ptr.vmem [resolvable:$true] %s27_s16 }
   0x4   :  { %s626_s17 = scalar_lea.vmem %s28_s16, 512  ;;  %p631_p1 = scmp.lt.s32.totalorder %s28_s16, %s28_s16 }
   0x5   :  { %p627_p0 = scmp.ne.s32.totalorder %s28_s16, %s626_s17  ;;  %p632_p2 = scmp.lt.s32.totalorder %s626_s17, %s626_s17 }
   0x7   :  { %p633_p3 = por %p632_p2, %p631_p1 }
   0x9   :  { %p634_p4 = pnand %p633_p3, %p627_p0 }
   0xb   :  { %637 = shalt.err (!%p634_p4)
}
   0xc   :  { %s705_s18 = smov 128   ;;  %s706_s19 = smov 8  }
   0xd   :  { %33 = dma.hbm_to_vmem [thread:$0]  %s818_s1, 512, %s28_s16, [#allocation6], %s705_s18, %s705_s18, %s706_s19  }
   0xe   :  { %s707_s22 = smov [#allocation2]   ;;  %s708_s24 = smov [#allocation7]  }
   0xf   :  { %s18_s23 = sshll.u32 %s707_s22, 4  ;;  %s41_s25 = sshll.u32 %s708_s24, 4  ;;  %s19_s23 = int_to_ptr.vmem [resolvable:$true] %s18_s23  ;;  %s42_s25 = int_to_ptr.vmem [resolvable:$true] %s41_s25 }
  0x10   :  { %s646_s26 = scalar_lea.vmem %s19_s23, 128  ;;  %p651_p6 = scmp.lt.s32.totalorder %s19_s23, %s19_s23 }
  0x11   :  { %p647_p5 = scmp.ne.s32.totalorder %s19_s23, %s646_s26  ;;  %p652_p7 = scmp.lt.s32.totalorder %s646_s26, %s646_s26 }
  0x13   :  { %p653_p8 = por %p652_p7, %p651_p6 }
  0x15   :  { %p654_p9 = pnand %p653_p8, %p647_p5 }
  0x17   :  { %657 = shalt.err (!%p654_p9)
}
  0x18   :  { %21 = dma.hbm_to_vmem [thread:$0]  %s817_s0, 128, %s19_s23, [#allocation3]  }
  0x19   :  { %s666_s29 = scalar_lea.vmem %s42_s25, 256  ;;  %p671_p11 = scmp.lt.s32.totalorder %s42_s25, %s42_s25 }
  0x1a   :  { %p667_p10 = scmp.ne.s32.totalorder %s42_s25, %s666_s29  ;;  %p672_p12 = scmp.lt.s32.totalorder %s666_s29, %s666_s29 }
  0x1c   :  { %p673_p13 = por %p672_p12, %p671_p11 }
  0x1e   :  { %p674_p0 = pnand %p673_p13, %p667_p10 }
  0x20   :  { %677 = shalt.err (!%p674_p0)
}
  0x21   :  { %47 = dma.hbm_to_vmem [thread:$0]  %s820_s3, 256, %s42_s25, [#allocation6], %s705_s18, %s705_s18, %s706_s19  }
  0x22   :  { %698 = dma.done.wait [#allocation3], 128  }
  0x23   :  { %699 = vsyncadd [#allocation3], 4294967168 }
  0x24   :  { %700 = dma.done.wait [#allocation6], 768  }
  0x25   :  { %701 = vsyncadd [#allocation6], 4294966528  ;;  %v709_v0 = vmov 0.0   ;;  %vm710_vm0 = vmmov 0   ;;  %v61_v1 = vld [vmem:[#allocation5 + $0x18] sm:$0xff]  ;;  %v60_v2 = vld [vmem:[#allocation5 + $0x10] sm:$0xff] }
  0x26   :  { %566 = vmatprep.subr.mxu0 %v709_v0  ;;  %574 = vmatprep.mubr.msk.f32.mxu0 %vm710_vm0, %v709_v0  ;;  %v59_v3 = vld [vmem:[#allocation5 + $0x8] sm:$0xff]  ;;  %v58_v4 = vld [vmem:[#allocation5] sm:$0xff]  ;;  %v57_v5 = vld [vmem:[#allocation2] sm:$0xff]  ;;  %vm69_vm1 = vcmask 261120   ;;  %s711_s5 = smov 112   ;;  %s712_s6 = smov 96  }
  0x27   :  { %577 = vmatprep.subr.mxu1 %v709_v0  ;;  %581 = vmatprep.mubr.msk.f32.mxu1 %vm710_vm0, %v709_v0  ;;  %v765_v6 = vld [vmem:[#allocation7 + $0x8] sm:$0xff]  ;;  %v767_v7 = vld [vmem:[#allocation7] sm:$0xff]  ;;  %v543_v8 = vld [vmem:[%s819_s2] ss:$0 sm:$0xff]  ;;  %v713_v22 = vmov 683565275  }
  0x28   :  { %567 = vmatpush3.msra.mxu0 %v61_v1  ;;  %578 = vmatpush3.msra.mxu1 %v765_v6  ;;  %v714_v24 = vmov 2475754826   ;;  %v715_v27 = vmov 2131351028   ;;  %v716_v30 = vmov 2102212464  }
  0x29   :  { %568 = vmatprep.subr.mxu0 %v709_v0  ;;  %579 = vmatprep.subr.mxu1 %v709_v0  ;;  %v717_v33 = vmov 920167782   ;;  %v718_v36 = vmov 1326507024   ;;  %vm355_vm15 = vcmask 130048   ;;  %s719_s2 = smov 16  }
  0x2a   :  { %569 = vmatpush3.msra.mxu0 %v60_v2  ;;  %580 = vmatpush3.msra.mxu1 %v767_v7  ;;  %s720_s7 = smov [#allocation8]  }
  0x2b   :  { %570 = vmatprep.subr.mxu0 %v709_v0  ;;  %584 = vmatprep.subr.mxu1 %v709_v0  ;;  %s533_s8 = sshll.u32 %s720_s7, 4  ;;  %s534_s8 = int_to_ptr.vmem [resolvable:$true] %s533_s8 }
  0x2c   :  { %571 = vmatpush3.msra.mxu0 %v59_v3  ;;  %s678_s9 = scalar_lea.vmem %s534_s8, 128  ;;  %p683_p2 = scmp.lt.s32.totalorder %s534_s8, %s534_s8 }
  0x2d   :  { %572 = vmatprep.subr.mxu0 %v709_v0  ;;  %p679_p1 = scmp.ne.s32.totalorder %s534_s8, %s678_s9  ;;  %p684_p3 = scmp.lt.s32.totalorder %s678_s9, %s678_s9 }
  0x2e   :  { %573 = vmatpush3.msra.mxu0 %v58_v4 }
  0x2f   :  { %575 = vmatmul.mubr.msk.f32.vlgmr.msra.gmra.mxu0 %vm69_vm1, %v57_v5  ;;  %p685_p4 = por %p684_p3, %p683_p2 }
  0x31   :  { %p686_p5 = pnand %p685_p4, %p679_p1 }
  0xef   :  { %v139_v9 = vpop.f32.mrf.mxu0 }
  0xf0   :  { %v776_v10 = vadd.f32 %v543_v8, %v139_v9 }
  0xf1   :  { %v576_v11 = vpop.f32.mrf.mxu0 }
  0xf2   :  { %v146_v12 = vand.u32 2139095040, %v776_v10  ;;  %353 = vrot.lane.b32.xlu0 %v776_v10, %s711_s5  ;;  %v143_v16 = vand.u32 2147483647, %v776_v10  ;;  %vm145_vm9 = vcmp.lt.s32.totalorder %v776_v10, 0  ;;  %vm235_vm14 = vweird.f32 %v776_v10 }
  0xf4   :  { %v147_v13 = vshrl.u32 %v146_v12, 23  ;;  %v150_v19 = vand.u32 8388607, %v143_v16  ;;  %vm144_vm10 = vcmp.le.f32.partialorder %v143_v16, 0.7853982 }
  0xf6   :  { %v545_v14 = vadd.s32 4294967169, %v147_v13  ;;  %428 = vrot.lane.b32.xlu0 %v776_v10, %s712_s6  ;;  %v151_v38 = vor.u32 8388608, %v150_v19 }
  0xf8   :  { %v153_v15 = vadd.s32 1, %v545_v14  ;;  %v191_v52 = vshll.u32 %v151_v38, 8 }
  0xfa   :  { %vm154_vm2 = vcmp.gt.s32.totalorder %v153_v15, 0 }
  0xfb   :  { %v155_v17 = vsel %vm154_vm2, %v153_v15, 0 }
  0xfc   :  { %v157_v18 = vand.u32 31, %v155_v17  ;;  %v156_v21 = vshrl.u32 %v155_v17, 5 }
  0xfe   :  { %v158_v20 = vsub.s32 32, %v157_v18  ;;  %v160_v23 = vshll.u32 %v713_v22, %v157_v18  ;;  %v163_v25 = vshll.u32 %v714_v24, %v157_v18  ;;  %v166_v29 = vshll.u32 %v715_v27, %v157_v18 }
  0xff   :  { %v169_v32 = vshll.u32 %v716_v30, %v157_v18  ;;  %v172_v35 = vshll.u32 %v717_v33, %v157_v18  ;;  %vm175_vm3 = vcmp.lt.s32.totalorder %v156_v21, 1  ;;  %vm178_vm4 = vcmp.lt.s32.totalorder %v156_v21, 4 }
 0x100   :  { %v161_v26 = vshrl.u32 %v714_v24, %v158_v20  ;;  %v164_v28 = vshrl.u32 %v715_v27, %v158_v20  ;;  %v167_v31 = vshrl.u32 %v716_v30, %v158_v20  ;;  %v170_v34 = vshrl.u32 %v717_v33, %v158_v20 }
 0x101   :  { %v173_v37 = vshrl.u32 %v718_v36, %v158_v20  ;;  %v159_v47 = vshrl.u32 %v713_v22, %v158_v20  ;;  %vm177_vm5 = vcmp.lt.s32.totalorder %v156_v21, 3  ;;  %vm176_vm6 = vcmp.lt.s32.totalorder %v156_v21, 2 }
 0x102   :  { %v162_v39 = vor.u32 %v161_v26, %v160_v23  ;;  %v165_v40 = vor.u32 %v164_v28, %v163_v25  ;;  %v168_v41 = vor.u32 %v167_v31, %v166_v29  ;;  %v171_v42 = vor.u32 %v170_v34, %v169_v32 }
 0x103   :  { %v174_v43 = vor.u32 %v173_v37, %v172_v35 }
 0x104   :  { %v180_v44 = vsel %vm178_vm4, %v168_v41, 2102212464  ;;  %v183_v45 = vsel %vm175_vm3, %v162_v39, %v165_v40  ;;  %v187_v46 = vsel %vm175_vm3, %v165_v40, %v168_v41  ;;  %v184_v48 = vsel %vm178_vm4, %v171_v42, 920167782 }
 0x105   :  { %v188_v49 = vsel %vm178_vm4, %v174_v43, 1326507024  ;;  %v185_v50 = vsel %vm177_vm5, %v168_v41, %v184_v48  ;;  %v179_v53 = vsel %vm175_vm3, %v159_v47, %v162_v39  ;;  %v181_v54 = vsel %vm177_vm5, %v165_v40, %v180_v44 }
 0x106   :  { %v189_v51 = vsel %vm177_vm5, %v171_v42, %v188_v49  ;;  %v186_v55 = vsel %vm176_vm6, %v183_v45, %v185_v50  ;;  %v182_v61 = vsel %vm176_vm6, %v179_v53, %v181_v54  ;;  %vm523_vm4 = vcmask 392192  }
 0x107   :  { %v190_v56 = vsel %vm176_vm6, %v187_v46, %v189_v51  ;;  %v787_v59 = vmul.u32.u64.low %v191_v52, %v186_v55  ;;  %v788_v60 = vmul.u32.u64.high %v191_v52, %v186_v55, %v787_v59  ;;  %v198_v63 = vmul.u32 %v191_v52, %v182_v61 }
 0x108   :  { %v784_v57 = vmul.u32.u64.low %v191_v52, %v190_v56  ;;  %v785_v58 = vmul.u32.u64.high %v191_v52, %v190_v56, %v784_v57  ;;  %vm525_vm5 = vcmask 523264  }
 0x109   :  { %v201_v62 = vadd.s32 1, %v788_v60 }
 0x10a   :  { %vm200_vm7 = vc.u32 %v785_v58, %v787_v59  ;;  %v199_v15 = vadd.s32 %v787_v59, %v785_v58 }
 0x10b   :  { %v202_v1 = vsel %vm200_vm7, %v201_v62, %v788_v60 }
 0x10c   :  { %v203_v2 = vadd.s32 %v202_v1, %v198_v63 }
 0x10e   :  { %v204_v3 = vadd.s32 536870912, %v203_v2 }
 0x110   :  { %v205_v4 = vshrl.u32 %v204_v3, 30 }
 0x112   :  { %v206_v5 = vshll.u32 %v205_v4, 30  ;;  %v229_v31 = vsub.s32 4, %v205_v4 }
 0x114   :  { %v207_v8 = vsub.s32 %v203_v2, %v206_v5  ;;  %v230_v32 = vsel %vm145_vm9, %v229_v31, %v205_v4 }
 0x115   :  { %v232_v33 = vsel %vm144_vm10, 0, %v230_v32 }
 0x116   :  { %v209_v9 = vsub.s32 0, %v207_v8  ;;  %v236_v34 = vand.u32 3, %v232_v33 }
 0x118   :  { %v546_v11 = vmin.u32 %v209_v9, %v207_v8  ;;  %vm241_vm11 = vcmp.eq.s32.totalorder %v236_v34, 2  ;;  %vm238_vm12 = vcmp.eq.s32.totalorder %v236_v34, 0  ;;  %vm237_vm13 = vcmp.lt.s32.totalorder %v236_v34, 2 }
 0x11a   :  { %v211_v12 = vclz %v546_v11 }
 0x11c   :  { %v547_v13 = vadd.s32 4294967294, %v211_v12 }
 0x11e   :  { %vm548_vm8 = vcmp.lt.s32.totalorder %v547_v13, 0 }
 0x11f   :  { %v214_v14 = vsel %vm548_vm8, 0, %v547_v13 }
 0x120   :  { %v215_v17 = vsub.s32 32, %v214_v14  ;;  %v219_v18 = vsub.s32 4294967266, %v214_v14  ;;  %v216_v19 = vshll.u32 %v207_v8, %v214_v14 }
 0x122   :  { %v217_v20 = vshrl.u32 %v199_v15, %v215_v17  ;;  %v220_v21 = vadd.s32 127, %v219_v18 }
 0x124   :  { %v218_v22 = vor.u32 %v217_v20, %v216_v19  ;;  %v221_v23 = vshll.u32 %v220_v21, 23 }
 0x126   :  { %v222_v24 = vor.u32 4788187, %v221_v23  ;;  %v225_v26 = vcvt.s32.f32 %v218_v22 }
 0x128   :  { %v223_v25 = vand.u32 2147483647, %v222_v24 }
 0x12a   :  { %v226_v27 = vmul.f32 %v225_v26, %v223_v25 }
 0x12c   :  { %v227_v28 = vxor.u32 2147483648, %v226_v27 }
 0x12e   :  { %v228_v29 = vsel %vm145_vm9, %v227_v28, %v226_v27 }
 0x12f   :  { %v231_v30 = vsel %vm144_vm10, %v776_v10, %v228_v29 }
 0x130   :  { %612 = vcosq.f32 %v231_v30 }
 0x131   :  { %614 = vsinq.f32 %v231_v30 }
 0x13d   :  { %v613_v35 = vpop.eup %612 }
 0x13e   :  { %v615_v36 = vpop.eup %614  ;;  %v242_v37 = vxor.u32 2147483648, %v613_v35 }
 0x13f   :  { %v239_v38 = vxor.u32 2147483648, %v615_v36 }
 0x140   :  { %v243_v39 = vsel %vm241_vm11, %v242_v37, %v615_v36 }
 0x141   :  { %v240_v40 = vsel %vm238_vm12, %v613_v35, %v239_v38 }
 0x142   :  { %v244_v16 = vsel %vm237_vm13, %v240_v40, %v243_v39 }
 0x143   :  { %v245_v41 = vsel %vm235_vm14, nan, %v244_v16 }
 0x164   :  { %v354_v42 = vpop.permute.xlu0 %353 }
 0x165   :  { %582 = vmatmul.mubr.msk.f32.vlgmr.msra.gmra.mxu1 %vm355_vm15, %v354_v42 }
 0x166   :  { %585 = vmatpush3.msra.mxu1 %v765_v6  ;;  %588 = vmatprep.mubr.msk.f32.mxu1 %vm710_vm0, %v709_v0  ;;  %v339_v6 = vadd.s32 3, %v232_v33 }
 0x167   :  { %586 = vmatprep.subr.mxu1 %v709_v0 }
 0x168   :  { %587 = vmatpush3.msra.mxu1 %v767_v7  ;;  %v429_v43 = vpop.permute.xlu0 %428  ;;  %v340_v52 = vand.u32 3, %v339_v6 }
 0x169   :  { %589 = vmatmul.mubr.msk.f32.vlgmr.msra.gmra.mxu1 %vm355_vm15, %v429_v43 }
 0x16a   :  { %vm342_vm0 = vcmp.eq.s32.totalorder %v340_v52, 0  ;;  %vm345_vm2 = vcmp.eq.s32.totalorder %v340_v52, 2  ;;  %vm341_vm3 = vcmp.lt.s32.totalorder %v340_v52, 2 }
 0x16b   :  { %v344_v0 = vsel %vm342_vm0, %v613_v35, %v239_v38  ;;  %v347_v53 = vsel %vm345_vm2, %v242_v37, %v615_v36 }
 0x16c   :  { %v348_v7 = vsel %vm341_vm3, %v344_v0, %v347_v53 }
 0x16d   :  { %v349_v54 = vsel %vm235_vm14, nan, %v348_v7 }
 0x225   :  { %v424_v44 = vpop.f32.mrf.mxu1 }
 0x226   :  { %v503_v47 = vmul.f32 %v424_v44, %v354_v42 }
 0x227   :  { %v583_v45 = vpop.f32.mrf.mxu1 }
 0x229   :  { %v498_v46 = vpop.f32.mrf.mxu1 }
 0x22a   :  { %v505_v48 = vmul.f32 %v498_v46, %v429_v43 }
 0x22b   :  { %v590_v49 = vpop.f32.mrf.mxu1 }
 0x22c   :  { %v506_v50 = vadd.f32 %v505_v48, %v503_v47 }
 0x22e   :  { %v507_v51 = vsel %vm355_vm15, %v506_v50, 0.0 }
 0x22f   :  { %508 = vadd.xlane.f32.xlu1 %v507_v51 }
 0x240   :  { %514 = vrot.lane.b32.xlu1 %v349_v54, %s719_s2 }
 0x2b8   :  { %v509_v55 = vpop.xlane.xlu1 %508 }
 0x2b9   :  { %616 = vrsqrt.f32 %v509_v55 }
 0x2bc   :  { %v515_v59 = vpop.permute.xlu1 %514 }
 0x2bd   :  { %v521_v60 = vsel %vm355_vm15, %v245_v41, %v515_v59 }
 0x2c6   :  { %v617_v56 = vpop.eup %616 }
 0x2c7   :  { %v511_v57 = vmul.f32 1.4142135, %v617_v56 }
 0x2c9   :  { %v512_v58 = vmul.f32 %v511_v57, %v776_v10 }
 0x2cb   :  { %518 = vrot.lane.b32.xlu0 %v512_v58, %s719_s2 }
 0x33d   :  { %v519_v61 = vpop.permute.xlu0 %518 }
 0x33e   :  { %v522_v62 = vsel %vm69_vm1, %v521_v60, %v519_v61 }
 0x33f   :  { %v524_v63 = vsel %vm523_vm4, %v522_v62, %v519_v61 }
 0x340   :  { %526 = vst.msk [vmem:[#allocation8] sm:$0xff] %vm525_vm5, %v524_v63 }
 0x341   :  { %689 = shalt.err (!%p686_p5)
}
 0x342   :  { %536 = dma.vmem_to_hbm [thread:$0]  %s534_s8, 128, %s821_s4, [#allocation4]  }
 0x343   :  { %702 = dma.done.wait [#allocation4], 128  }
 0x344   :  { %703 = vsyncadd [#allocation4], 4294967168 }
 0x345   :  { %540 = vsyncpa [#allocation3], 1 }
 0x346   :  { %541 = vsyncpa [#allocation6], 1 }
 0x347   :  { %542 = vsyncpa [#allocation4], 1 }

</bundles_post_ra>
